<compile_context>
chip_gen: v6e
topology: v6e:2x2x1
jax: 0.10.0
libtpu: 0.0.40
codegen_flags: <defaults>
</compile_context>

<pallas_src>
import jax
import jax.numpy as jnp
from jax.experimental import pallas as pl
from jax.experimental.pallas import tpu as pltpu

_LANE = 128
_SUBLANE = 8
_VMEM_BUDGET_BYTES = 40 << 20     # conservative: fits v7x's 64 MiB physical VMEM
_VMEM_LIMIT_BYTES = 48 << 20


def _round_up(x, m):
    return (x + m - 1) // m * m


# --------------------------------------------------------------------------- #
# Kernel
# --------------------------------------------------------------------------- #
def decoder_kernel(z_ref, w1_ref, b1_ref, w2_ref, b2_ref, o_ref):
    # fc1: z @ W1 + b1, ReLU (f32 accumulation on the MXU; K = z_size, unpadded)
    z = z_ref[...]
    w1 = w1_ref[...]
    h = jnp.dot(z.astype(w1.dtype), w1, preferred_element_type=jnp.float32)
    h = jnp.maximum(h + b1_ref[...], 0.0)            # b1 is [1, hid_p] f32
    # fc2: h @ W2 + b2
    y = jnp.dot(h.astype(w2_ref.dtype), w2_ref[...],
                preferred_element_type=jnp.float32)
    y = y + b2_ref[...]                              # b2 is [1, out_p] f32
    # sigmoid(y) == 0.5 * (tanh(y/2) + 1): tanh uses the EUP slot, epilogue
    # stays f32 (v5e-safe) and off the VALU divide.
    o_ref[...] = (0.5 * (jnp.tanh(0.5 * y) + 1.0)).astype(o_ref.dtype)


# --------------------------------------------------------------------------- #
# One-time parameter preparation (call at model init, reuse every forward)
# --------------------------------------------------------------------------- #
def prepare_decoder_params(w1, b1, w2, b2, param_dtype=None):
    """w1: [z_size, hidden], b1: [hidden], w2: [hidden, output], b2: [output].
    Pads hidden/output to multiples of 128 lanes and optionally casts the
    weight matrices (e.g. to bf16 for v6e/v7x bandwidth).  Biases stay f32 so
    the in-kernel epilogue is f32 on every TPU generation."""
    z_size, hidden = w1.shape
    output = w2.shape[1]
    hid_p = _round_up(hidden, _LANE)
    out_p = _round_up(output, _LANE)

    w1p = jnp.pad(w1, ((0, 0), (0, hid_p - hidden)))
    b1p = jnp.pad(b1.reshape(1, hidden).astype(jnp.float32),
                  ((0, 0), (0, hid_p - hidden)))
    w2p = jnp.pad(w2, ((0, hid_p - hidden), (0, out_p - output)))
    b2p = jnp.pad(b2.reshape(1, output).astype(jnp.float32),
                  ((0, 0), (0, out_p - output)))
    if param_dtype is not None:
        w1p = w1p.astype(param_dtype)
        w2p = w2p.astype(param_dtype)
    return (w1p, b1p, w2p, b2p, output)


# --------------------------------------------------------------------------- #
# Batch-tile selection (corrected VMEM accounting)
# --------------------------------------------------------------------------- #
def _choose_block_b(B, z_size, hid_p, out_p, in_itemsize, out_itemsize,
                    weights_bytes, budget):
    def fits(bb):
        z_buf = 2 * bb * z_size * in_itemsize        # double-buffered z tile
        o_buf = 2 * bb * out_p * out_itemsize        # double-buffered out tile
        tmp = bb * (hid_p + out_p) * 4               # in-kernel f32 h / y temporaries
        return weights_bytes + z_buf + o_buf + tmp <= budget

    b8 = _round_up(B, _SUBLANE)
    if fits(b8):
        return B                                     # single step, whole batch
    for cand in (2048, 1024, 512, 256, 128, 64, 32, 16, 8):
        if cand < b8 and fits(cand):
            return cand
    return _SUBLANE


# --------------------------------------------------------------------------- #
# Forward wrapper
# --------------------------------------------------------------------------- #
def decoder_forward(z, params, *, block_b=None, out_dtype=None):
    """z: [B, z_size]; params: output of prepare_decoder_params -> [B, output]."""
    w1p, b1p, w2p, b2p, output = params
    B, z_size = z.shape
    hid_p = w1p.shape[1]
    out_p = w2p.shape[1]
    if out_dtype is None:
        out_dtype = z.dtype
    out_itemsize = jnp.dtype(out_dtype).itemsize

    weights_bytes = ((w1p.size + w2p.size) * jnp.dtype(w1p.dtype).itemsize
                     + (b1p.size + b2p.size) * 4)
    if weights_bytes > _VMEM_BUDGET_BYTES - (1 << 20):
        # TODO(synk): add a K/N-tiled fallback (grid over hidden/output with a
        # pl.when-initialized f32 accumulator) for decoders whose weights
        # exceed resident VMEM instead of failing here.
        raise NotImplementedError(
            "Decoder weights too large for the resident-weight kernel")

    if block_b is None:
        block_b = _choose_block_b(B, z_size, hid_p, out_p,
                                  jnp.dtype(z.dtype).itemsize, out_itemsize,
                                  weights_bytes, _VMEM_BUDGET_BYTES)

    if block_b >= B:
        # Whole batch in one step: block dims equal full array dims, so no
        # (8,128) alignment padding of the batch is needed at all.
        block_b, b_pad, num_steps = B, B, 1
        z_in = z
    else:
        block_b = max(_SUBLANE, _round_up(block_b, _SUBLANE))
        b_pad = _round_up(B, block_b)
        num_steps = b_pad // block_b
        z_in = z if b_pad == B else jnp.pad(z, ((0, b_pad - B), (0, 0)))

    cost = pl.CostEstimate(
        flops=2 * b_pad * (z_size * hid_p + hid_p * out_p),
        transcendentals=b_pad * out_p,
        bytes_accessed=(b_pad * z_size * jnp.dtype(z.dtype).itemsize
                        + weights_bytes
                        + b_pad * out_p * out_itemsize),
    )

    out_padded = pl.pallas_call(
        decoder_kernel,
        out_shape=jax.ShapeDtypeStruct((b_pad, out_p), out_dtype),
        grid_spec=pltpu.PrefetchScalarGridSpec(
            num_scalar_prefetch=0,
            grid=(num_steps,),
            in_specs=[
                pl.BlockSpec((block_b, z_size), lambda i: (i, 0)),   # z (unpadded K)
                pl.BlockSpec((z_size, hid_p), lambda i: (0, 0)),     # W1 (resident)
                pl.BlockSpec((1, hid_p), lambda i: (0, 0)),          # b1 (resident)
                pl.BlockSpec((hid_p, out_p), lambda i: (0, 0)),      # W2 (resident)
                pl.BlockSpec((1, out_p), lambda i: (0, 0)),          # b2 (resident)
            ],
            out_specs=pl.BlockSpec((block_b, out_p), lambda i: (i, 0)),
        ),
        compiler_params=pltpu.CompilerParams(
            # Batch axis is independent.  On v7x, true dual-TC sharding would
            # need core-parallel semantics / core_map; plain "parallel" is a
            # measured near-no-op on v5e/v6e and harmless here.
            dimension_semantics=("parallel",),
            vmem_limit_bytes=_VMEM_LIMIT_BYTES,
        ),
        cost_estimate=cost,
    )(z_in, w1p, b1p, w2p, b2p)

    # Only slice when padding actually happened (avoids a post-kernel copy on
    # the common aligned path).
    if b_pad == B and out_p == output:
        return out_padded
    return out_padded[:B, :output]


# --------------------------------------------------------------------------- #
# Reference + test harness
# --------------------------------------------------------------------------- #
def reference_forward(z, w1, b1, w2, b2):
    h = jnp.maximum(z @ w1 + b1.reshape(1, -1), 0.0)
    return jax.nn.sigmoid(h @ w2 + b2.reshape(1, -1))


def _make_case(key, batch, z_size, hidden, output):
    kz, kw1, kb1, kw2, kb2 = jax.random.split(key, 5)
    lim1 = 1.0 / jnp.sqrt(z_size)
    lim2 = 1.0 / jnp.sqrt(hidden)
    z = jax.random.normal(kz, (batch, z_size), dtype=jnp.float32)
    w1 = jax.random.uniform(kw1, (z_size, hidden), jnp.float32, -lim1, lim1)
    b1 = jax.random.uniform(kb1, (hidden,), jnp.float32, -lim1, lim1)
    w2 = jax.random.uniform(kw2, (hidden, output), jnp.float32, -lim2, lim2)
    b2 = jax.random.uniform(kb2, (output,), jnp.float32, -lim2, lim2)
    return z, w1, b1, w2, b2


if __name__ == "__main__":
    key = jax.random.PRNGKey(0)
    k_small, k_tiled, k_bf16 = jax.random.split(key, 3)

    # 1) Small shapes consistent with the module's Linear stack (single-step,
    #    no padding anywhere -> no post-kernel slice).
    z, w1, b1, w2, b2 = _make_case(k_small, batch=8, z_size=32, hidden=64, output=128)
    params = prepare_decoder_params(w1, b1, w2, b2)
    out = jax.block_until_ready(decoder_forward(z, params))
    ref = reference_forward(z, w1, b1, w2, b2)
    assert out.shape == (8, 128)
    assert jnp.allclose(out, ref, atol=1e-5, rtol=1e-5), "mismatch (small)"

    # 2) Forced batch tiling: batch=300 with block_b=128 exercises batch
    #    padding, multi-step grid, and the output lane pad + final slice.
    z, w1, b1, w2, b2 = _make_case(k_tiled, batch=300, z_size=32, hidden=64, output=100)
    params = prepare_decoder_params(w1, b1, w2, b2)
    out = jax.block_until_ready(decoder_forward(z, params, block_b=128))
    ref = reference_forward(z, w1, b1, w2, b2)
    assert out.shape == (300, 100)
    assert jnp.allclose(out, ref, atol=1e-5, rtol=1e-5), "mismatch (tiled)"

    # 3) bf16 weight storage (v6e/v7x bandwidth path); f32 MXU accumulation and
    #    f32 epilogue, so only weight-rounding error remains.
    z, w1, b1, w2, b2 = _make_case(k_bf16, batch=64, z_size=32, hidden=64, output=100)
    params = prepare_decoder_params(w1, b1, w2, b2, param_dtype=jnp.bfloat16)
    out = jax.block_until_ready(decoder_forward(z, params))
    ref = reference_forward(z, w1, b1, w2, b2)
    assert out.shape == (64, 100)
    assert jnp.allclose(out, ref, atol=5e-2, rtol=5e-2), "mismatch (bf16 params)"

    print("KERNEL_OK")
</pallas_src>

<mosaic_0001>
module attributes {stable_mosaic.version = 11 : i64} {
  func.func @decoder_kernel(%arg0: i32, %arg1: memref<8x32xf32, #tpu.memory_space<vmem>>, %arg2: memref<32x128xf32, #tpu.memory_space<vmem>>, %arg3: memref<1x128xf32, #tpu.memory_space<vmem>>, %arg4: memref<128x128xf32, #tpu.memory_space<vmem>>, %arg5: memref<1x128xf32, #tpu.memory_space<vmem>>, %arg6: memref<8x128xf32, #tpu.memory_space<vmem>>) attributes {dimension_semantics = [#tpu.dimension_semantics<parallel>], iteration_bounds = array<i64: 1>, scalar_prefetch = 0 : i64, scratch_operands = 0 : i64, tpu.core_type = #tpu.core_type<tc>, window_params = [{transform_indices = @transform_0, window_bounds = array<i64: 8, 32>}, {pipeline_mode = #tpu.pipeline_mode<synchronous>, transform_indices = @transform_1, window_bounds = array<i64: 32, 128>}, {pipeline_mode = #tpu.pipeline_mode<synchronous>, transform_indices = @transform_2, window_bounds = array<i64: 1, 128>}, {pipeline_mode = #tpu.pipeline_mode<synchronous>, transform_indices = @transform_3, window_bounds = array<i64: 128, 128>}, {pipeline_mode = #tpu.pipeline_mode<synchronous>, transform_indices = @transform_4, window_bounds = array<i64: 1, 128>}, {transform_indices = @transform_5, window_bounds = array<i64: 8, 128>}]} {
    %c0 = arith.constant 0 : index
    %c0_0 = arith.constant 0 : index
    %0 = vector.load %arg1[%c0, %c0_0] : memref<8x32xf32, #tpu.memory_space<vmem>>, vector<8x32xf32>
    %c0_1 = arith.constant 0 : index
    %c0_2 = arith.constant 0 : index
    %1 = vector.load %arg2[%c0_1, %c0_2] : memref<32x128xf32, #tpu.memory_space<vmem>>, vector<32x128xf32>
    %cst = arith.constant dense<0.000000e+00> : vector<8x128xf32>
    %2 = tpu.matmul %0, %1, %cst {dimension_numbers = #tpu.dot_dimension_numbers<[1], [0], [0], [1], [0, 0, 1, 1], [], []>} : vector<8x32xf32>, vector<32x128xf32>, vector<8x128xf32> -> vector<8x128xf32>
    %c0_3 = arith.constant 0 : index
    %c0_4 = arith.constant 0 : index
    %3 = vector.load %arg3[%c0_3, %c0_4] : memref<1x128xf32, #tpu.memory_space<vmem>>, vector<1x128xf32>
    %4 = vector.broadcast %3 : vector<1x128xf32> to vector<8x128xf32>
    %5 = arith.addf %2, %4 : vector<8x128xf32>
    %cst_5 = arith.constant 0.000000e+00 : f32
    %6 = vector.broadcast %cst_5 : f32 to vector<8x128xf32>
    %7 = arith.maximumf %5, %6 : vector<8x128xf32>
    %c0_6 = arith.constant 0 : index
    %c0_7 = arith.constant 0 : index
    %8 = vector.load %arg4[%c0_6, %c0_7] : memref<128x128xf32, #tpu.memory_space<vmem>>, vector<128x128xf32>
    %cst_8 = arith.constant dense<0.000000e+00> : vector<8x128xf32>
    %9 = tpu.matmul %7, %8, %cst_8 {dimension_numbers = #tpu.dot_dimension_numbers<[1], [0], [0], [1], [0, 0, 1, 1], [], []>} : vector<8x128xf32>, vector<128x128xf32>, vector<8x128xf32> -> vector<8x128xf32>
    %c0_9 = arith.constant 0 : index
    %c0_10 = arith.constant 0 : index
    %10 = vector.load %arg5[%c0_9, %c0_10] : memref<1x128xf32, #tpu.memory_space<vmem>>, vector<1x128xf32>
    %11 = vector.broadcast %10 : vector<1x128xf32> to vector<8x128xf32>
    %12 = arith.addf %9, %11 : vector<8x128xf32>
    %cst_11 = arith.constant 5.000000e-01 : f32
    %13 = vector.broadcast %cst_11 : f32 to vector<8x128xf32>
    %14 = arith.mulf %13, %12 : vector<8x128xf32>
    %15 = math.tanh %14 : vector<8x128xf32>
    %cst_12 = arith.constant 1.000000e+00 : f32
    %16 = vector.broadcast %cst_12 : f32 to vector<8x128xf32>
    %17 = arith.addf %15, %16 : vector<8x128xf32>
    %cst_13 = arith.constant 5.000000e-01 : f32
    %18 = vector.broadcast %cst_13 : f32 to vector<8x128xf32>
    %19 = arith.mulf %18, %17 : vector<8x128xf32>
    %c0_14 = arith.constant 0 : index
    %c0_15 = arith.constant 0 : index
    %20 = vector.load %arg6[%c0_14, %c0_15] : memref<8x128xf32, #tpu.memory_space<vmem>>, vector<8x128xf32>
    tpu.vector_store %arg6[%c0_14, %c0_15], %19 {strides = array<i32>} : memref<8x128xf32, #tpu.memory_space<vmem>>, vector<8x128xf32>,
    return
  }
  func.func @transform_0(%arg0: i32) -> (i32, i32) {
    %c0_i32 = arith.constant 0 : i32
    %c0_i32_0 = arith.constant 0 : i32
    return %arg0, %c0_i32 : i32, i32
  }
  func.func @transform_1(%arg0: i32) -> (i32, i32) {
    %c0_i32 = arith.constant 0 : i32
    %c0_i32_0 = arith.constant 0 : i32
    %c0_i32_1 = arith.constant 0 : i32
    return %c0_i32, %c0_i32_0 : i32, i32
  }
  func.func @transform_2(%arg0: i32) -> (i32, i32) {
    %c0_i32 = arith.constant 0 : i32
    %c0_i32_0 = arith.constant 0 : i32
    %c0_i32_1 = arith.constant 0 : i32
    return %c0_i32, %c0_i32_0 : i32, i32
  }
  func.func @transform_3(%arg0: i32) -> (i32, i32) {
    %c0_i32 = arith.constant 0 : i32
    %c0_i32_0 = arith.constant 0 : i32
    %c0_i32_1 = arith.constant 0 : i32
    return %c0_i32, %c0_i32_0 : i32, i32
  }
  func.func @transform_4(%arg0: i32) -> (i32, i32) {
    %c0_i32 = arith.constant 0 : i32
    %c0_i32_0 = arith.constant 0 : i32
    %c0_i32_1 = arith.constant 0 : i32
    return %c0_i32, %c0_i32_0 : i32, i32
  }
  func.func @transform_5(%arg0: i32) -> (i32, i32) {
    %c0_i32 = arith.constant 0 : i32
    %c0_i32_0 = arith.constant 0 : i32
    return %arg0, %c0_i32 : i32, i32
  }
}

</mosaic_0001>

<bundles_post_ra>
// kernel: tpu_custom_call.1
= control target key start
LH: loop header
LB: loop body
LE: loop exit
PB: predicated region body
PF: predicated region fallthrough
CT: control target
= control target key end

     0   :  { %10 = vsyncpa [#allocation3], 0  ;;  %s506_s0 = inlined_call_operand.hbm [shape: f32[8,32], index: 0, kind: input, shape index: {}]   ;;  %s507_s1 = inlined_call_operand.hbm [shape: f32[32,128], index: 1, kind: input, shape index: {}]   ;;  %s508_s2 = inlined_call_operand.vmem [shape: f32[1,128], index: 2, kind: input, shape index: {}]   ;;  %s509_s3 = inlined_call_operand.hbm [shape: f32[128,128], index: 3, kind: input, shape index: {}]   ;;  %s510_s4 = inlined_call_operand.vmem [shape: f32[1,128], index: 4, kind: input, shape index: {}]   ;;  %s511_s5 = inlined_call_operand.hbm [shape: f32[8,128], index: 5, kind: output, shape index: {}]  }
   0x1   :  { %11 = vsyncpa [#allocation6], 0 }
   0x2   :  { %12 = vsyncpa [#allocation4], 0  ;;  %s428_s18 = smov [#allocation5]  }
   0x3   :  { %s28_s19 = sshll.u32 %s428_s18, 4  ;;  %s29_s19 = int_to_ptr.vmem [resolvable:$true] %s28_s19 }
   0x4   :  { %s350_s20 = scalar_lea.vmem %s29_s19, 512  ;;  %p355_p1 = scmp.lt.s32.totalorder %s29_s19, %s29_s19 }
   0x5   :  { %p351_p0 = scmp.ne.s32.totalorder %s29_s19, %s350_s20  ;;  %p356_p2 = scmp.lt.s32.totalorder %s350_s20, %s350_s20 }
   0x7   :  { %p357_p3 = por %p356_p2, %p355_p1 }
   0x9   :  { %p358_p4 = pnand %p357_p3, %p351_p0 }
   0xb   :  { %361 = shalt.err (!%p358_p4)
}
   0xc   :  { %s429_s21 = smov 128   ;;  %s430_s22 = smov 8  }
   0xd   :  { %34 = dma.hbm_to_vmem [thread:$0]  %s507_s1, 512, %s29_s19, [#allocation6], %s429_s21, %s429_s21, %s430_s22  }
   0xe   :  { %s431_s25 = smov [#allocation2]   ;;  %s432_s27 = smov [#allocation7]  }
   0xf   :  { %s19_s26 = sshll.u32 %s431_s25, 4  ;;  %s42_s28 = sshll.u32 %s432_s27, 4  ;;  %s20_s26 = int_to_ptr.vmem [resolvable:$true] %s19_s26  ;;  %s43_s28 = int_to_ptr.vmem [resolvable:$true] %s42_s28 }
  0x10   :  { %s370_s29 = scalar_lea.vmem %s20_s26, 128  ;;  %p375_p6 = scmp.lt.s32.totalorder %s20_s26, %s20_s26 }
  0x11   :  { %p371_p5 = scmp.ne.s32.totalorder %s20_s26, %s370_s29  ;;  %p376_p7 = scmp.lt.s32.totalorder %s370_s29, %s370_s29 }
  0x13   :  { %p377_p8 = por %p376_p7, %p375_p6 }
  0x15   :  { %p378_p9 = pnand %p377_p8, %p371_p5 }
  0x17   :  { %381 = shalt.err (!%p378_p9)
}
  0x18   :  { %22 = dma.hbm_to_vmem [thread:$0]  %s506_s0, 128, %s20_s26, [#allocation3]  }
  0x19   :  { %s390_s7 = scalar_lea.vmem %s43_s28, 2048  ;;  %p395_p11 = scmp.lt.s32.totalorder %s43_s28, %s43_s28 }
  0x1a   :  { %p391_p10 = scmp.ne.s32.totalorder %s43_s28, %s390_s7  ;;  %p396_p12 = scmp.lt.s32.totalorder %s390_s7, %s390_s7 }
  0x1c   :  { %p397_p13 = por %p396_p12, %p395_p11 }
  0x1e   :  { %p398_p0 = pnand %p397_p13, %p391_p10 }
  0x20   :  { %401 = shalt.err (!%p398_p0)
}
  0x21   :  { %48 = dma.hbm_to_vmem [thread:$0]  %s509_s3, 2048, %s43_s28, [#allocation6], %s429_s21, %s429_s21, %s430_s22  }
  0x22   :  { %422 = dma.done.wait [#allocation3], 128  }
  0x23   :  { %423 = vsyncadd [#allocation3], 4294967168 }
  0x24   :  { %424 = dma.done.wait [#allocation6], 2560  }
  0x25   :  { %425 = vsyncadd [#allocation6], 4294964736  ;;  %v433_v0 = vmov 0.0   ;;  %vm434_vm0 = vmmov 0   ;;  %v64_v1 = vld [vmem:[#allocation5 + $0x18] sm:$0xff]  ;;  %v63_v2 = vld [vmem:[#allocation5 + $0x10] sm:$0xff] }
  0x26   :  { %286 = vmatprep.subr.mxu0 %v433_v0  ;;  %294 = vmatprep.mubr.msk.f32.mxu0 %vm434_vm0, %v433_v0  ;;  %v162_v3 = vld [vmem:[#allocation7 + $0x78] sm:$0xff]  ;;  %v62_v4 = vld [vmem:[#allocation5 + $0x8] sm:$0xff]  ;;  %v161_v5 = vld [vmem:[#allocation7 + $0x70] sm:$0xff]  ;;  %vm72_vm1 = vcmask 261120   ;;  %s435_s11 = smov [#allocation8]  }
  0x27   :  { %297 = vmatprep.subr.mxu1 %v433_v0  ;;  %329 = vmatprep.mubr.msk.f32.mxu1 %vm434_vm0, %v433_v0  ;;  %v160_v6 = vld [vmem:[#allocation7 + $0x68] sm:$0xff]  ;;  %v61_v7 = vld [vmem:[#allocation5] sm:$0xff]  ;;  %v60_v8 = vld [vmem:[#allocation2] sm:$0xff]  ;;  %s251_s12 = sshll.u32 %s435_s11, 4  ;;  %s252_s12 = int_to_ptr.vmem [resolvable:$true] %s251_s12 }
  0x28   :  { %287 = vmatpush3.msra.mxu0 %v64_v1  ;;  %298 = vmatpush3.msra.mxu1 %v162_v3  ;;  %v159_v9 = vld [vmem:[#allocation7 + $0x60] sm:$0xff]  ;;  %v158_v10 = vld [vmem:[#allocation7 + $0x58] sm:$0xff]  ;;  %v157_v11 = vld [vmem:[#allocation7 + $0x50] sm:$0xff]  ;;  %p407_p2 = scmp.lt.s32.totalorder %s252_s12, %s252_s12 }
  0x29   :  { %288 = vmatprep.subr.mxu0 %v433_v0  ;;  %299 = vmatprep.subr.mxu1 %v433_v0  ;;  %v156_v12 = vld [vmem:[#allocation7 + $0x48] sm:$0xff]  ;;  %v155_v13 = vld [vmem:[#allocation7 + $0x40] sm:$0xff]  ;;  %v154_v14 = vld [vmem:[#allocation7 + $0x38] sm:$0xff] }
  0x2a   :  { %289 = vmatpush3.msra.mxu0 %v63_v2  ;;  %300 = vmatpush3.msra.mxu1 %v161_v5  ;;  %v153_v15 = vld [vmem:[#allocation7 + $0x30] sm:$0xff]  ;;  %v152_v16 = vld [vmem:[#allocation7 + $0x28] sm:$0xff]  ;;  %v151_v17 = vld [vmem:[#allocation7 + $0x20] sm:$0xff] }
  0x2b   :  { %290 = vmatprep.subr.mxu0 %v433_v0  ;;  %301 = vmatprep.subr.mxu1 %v433_v0  ;;  %v150_v18 = vld [vmem:[#allocation7 + $0x18] sm:$0xff]  ;;  %v149_v19 = vld [vmem:[#allocation7 + $0x10] sm:$0xff]  ;;  %v148_v20 = vld [vmem:[#allocation7 + $0x8] sm:$0xff] }
  0x2c   :  { %291 = vmatpush3.msra.mxu0 %v62_v4  ;;  %302 = vmatpush3.msra.mxu1 %v160_v6  ;;  %v147_v21 = vld [vmem:[#allocation7] sm:$0xff]  ;;  %v261_v22 = vld [vmem:[%s508_s2] ss:$0 sm:$0xff]  ;;  %s402_s2 = scalar_lea.vmem %s252_s12, 128 }
  0x2d   :  { %292 = vmatprep.subr.mxu0 %v433_v0  ;;  %303 = vmatprep.subr.mxu1 %v433_v0  ;;  %v263_v27 = vld [vmem:[%s510_s4] ss:$0 sm:$0xff]  ;;  %p403_p1 = scmp.ne.s32.totalorder %s252_s12, %s402_s2  ;;  %p408_p3 = scmp.lt.s32.totalorder %s402_s2, %s402_s2 }
  0x2e   :  { %293 = vmatpush3.msra.mxu0 %v61_v7  ;;  %304 = vmatpush3.msra.mxu1 %v159_v9 }
  0x2f   :  { %295 = vmatmul.mubr.msk.f32.vlgmr.msra.gmra.mxu0 %vm72_vm1, %v60_v8  ;;  %305 = vmatprep.subr.mxu1 %v433_v0  ;;  %p409_p4 = por %p408_p3, %p407_p2 }
  0x30   :  { %306 = vmatpush3.msra.mxu1 %v158_v10 }
  0x31   :  { %307 = vmatprep.subr.mxu1 %v433_v0  ;;  %p410_p5 = pnand %p409_p4, %p403_p1 }
  0x32   :  { %308 = vmatpush3.msra.mxu1 %v157_v11 }
  0x33   :  { %309 = vmatprep.subr.mxu1 %v433_v0 }
  0x34   :  { %310 = vmatpush3.msra.mxu1 %v156_v12 }
  0x35   :  { %311 = vmatprep.subr.mxu1 %v433_v0 }
  0x36   :  { %312 = vmatpush3.msra.mxu1 %v155_v13 }
  0x37   :  { %313 = vmatprep.subr.mxu1 %v433_v0 }
  0x38   :  { %314 = vmatpush3.msra.mxu1 %v154_v14 }
  0x39   :  { %315 = vmatprep.subr.mxu1 %v433_v0 }
  0x3a   :  { %316 = vmatpush3.msra.mxu1 %v153_v15 }
  0x3b   :  { %317 = vmatprep.subr.mxu1 %v433_v0 }
  0x3c   :  { %318 = vmatpush3.msra.mxu1 %v152_v16 }
  0x3d   :  { %319 = vmatprep.subr.mxu1 %v433_v0 }
  0x3e   :  { %320 = vmatpush3.msra.mxu1 %v151_v17 }
  0x3f   :  { %321 = vmatprep.subr.mxu1 %v433_v0 }
  0x40   :  { %322 = vmatpush3.msra.mxu1 %v150_v18 }
  0x41   :  { %323 = vmatprep.subr.mxu1 %v433_v0 }
  0x42   :  { %324 = vmatpush3.msra.mxu1 %v149_v19 }
  0x43   :  { %325 = vmatprep.subr.mxu1 %v433_v0 }
  0x44   :  { %326 = vmatpush3.msra.mxu1 %v148_v20 }
  0x45   :  { %327 = vmatprep.subr.mxu1 %v433_v0 }
  0x46   :  { %328 = vmatpush3.msra.mxu1 %v147_v21 }
  0xef   :  { %v142_v23 = vpop.f32.mrf.mxu0 }
  0xf0   :  { %v143_v24 = vadd.f32 %v261_v22, %v142_v23 }
  0xf1   :  { %v296_v25 = vpop.f32.mrf.mxu0 }
  0xf2   :  { %v146_v26 = vmax.f32 %v143_v24, 0.0 }
  0xf4   :  { %330 = vmatmul.mubr.f32.vlgmr.msra.gmra.mxu1 %v146_v26 }
 0x1b4   :  { %v236_v28 = vpop.f32.mrf.mxu1 }
 0x1b5   :  { %v237_v29 = vadd.f32 %v263_v27, %v236_v28 }
 0x1b6   :  { %v331_v30 = vpop.f32.mrf.mxu1 }
 0x1b7   :  { %v240_v31 = vmul.f32 0.5, %v237_v29 }
 0x1b9   :  { %340 = vtanh.f32 %v240_v31 }
 0x1c6   :  { %v341_v32 = vpop.eup %340 }
 0x1c7   :  { %v242_v33 = vadd.f32 1.0, %v341_v32 }
 0x1c9   :  { %v243_v34 = vmul.f32 0.5, %v242_v33 }
 0x1cb   :  { %244 = vst [vmem:[#allocation8] sm:$0xff] %v243_v34 }
 0x1cc   :  { %413 = shalt.err (!%p410_p5)
}
 0x1cd   :  { %254 = dma.vmem_to_hbm [thread:$0]  %s252_s12, 128, %s511_s5, [#allocation4]  }
 0x1ce   :  { %426 = dma.done.wait [#allocation4], 128  }
 0x1cf   :  { %427 = vsyncadd [#allocation4], 4294967168 }
 0x1d0   :  { %258 = vsyncpa [#allocation3], 1 }
 0x1d1   :  { %259 = vsyncpa [#allocation6], 1 }
 0x1d2   :  { %260 = vsyncpa [#allocation4], 1 }

</bundles_post_ra>
